<compile_context>
chip_gen: v7x
topology: tpu7x:2x2x1
jax: 0.10.0
libtpu: 0.0.40
codegen_flags: <defaults>
</compile_context>

<pallas_src>
import math

import jax
import jax.numpy as jnp
from jax.experimental import pallas as pl
from jax.experimental.pallas import tpu as pltpu


def _round_up(x, m):
    return ((x + m - 1) // m) * m


# --------------------------------------------------------------------------
# Pass 1: node-feature projection  x1 = x @ W   (row-tiled, f32 accumulate)
# --------------------------------------------------------------------------
def _proj_kernel(x_ref, w_ref, out_ref):
    out_ref[...] = jnp.dot(
        x_ref[...], w_ref[...], preferred_element_type=jnp.float32
    ).astype(out_ref.dtype)


# --------------------------------------------------------------------------
# Pass 2: neighborhood aggregation  out = adj @ x1 + bias
# grid = (row_tiles, k_tiles); f32 accumulator in VMEM scratch.
# --------------------------------------------------------------------------
def _agg_kernel(adj_ref, x1_ref, b_ref, out_ref, acc_ref):
    k = pl.program_id(1)

    @pl.when(k == 0)
    def _():
        acc_ref[...] = jnp.zeros_like(acc_ref)

    acc_ref[...] += jnp.dot(
        adj_ref[...], x1_ref[...], preferred_element_type=jnp.float32
    )

    @pl.when(k == pl.num_programs(1) - 1)
    def _():
        # Bias add once, in f32, on the finalized accumulator; single cast.
        out_ref[...] = (acc_ref[...] + b_ref[...]).astype(out_ref.dtype)


def graph_convolution(
    x,
    weight,
    adj,
    bias=None,
    *,
    compute_dtype=None,           # None = stream inputs in their native dtype
    tile_rows=512,                # TM (row tile of adj / output)
    tile_k=512,                   # TK (adj contraction tile)
):
    """Pallas GCN layer:  adj @ (x @ weight) [+ bias]."""
    n, in_feats = x.shape
    out_feats = weight.shape[1]
    out_dtype = x.dtype
    cdt = jnp.dtype(compute_dtype) if compute_dtype is not None else jnp.dtype(x.dtype)

    # ---- padded / tiled geometry (lane-dense output, 128-aligned tiles) ----
    out_p = _round_up(out_feats, 128)
    n_128 = _round_up(n, 128)
    tm = min(_round_up(tile_rows, 128), n_128)
    tk = min(_round_up(tile_k, 128), n_128)
    n_rows_p = _round_up(n, tm)   # output / adj row padding
    n_k_p = _round_up(n, tk)      # contraction / x1 row padding

    x_p = jnp.pad(x, ((0, n_k_p - n), (0, 0))).astype(cdt)
    w_p = jnp.pad(weight, ((0, 0), (0, out_p - out_feats))).astype(cdt)
    adj_p = jnp.pad(adj, ((0, n_rows_p - n), (0, n_k_p - n))).astype(cdt)
    if bias is None:
        b_p = jnp.zeros((1, out_p), jnp.float32)
    else:
        b_p = jnp.pad(
            bias.reshape(1, out_feats).astype(jnp.float32),
            ((0, 0), (0, out_p - out_feats)),
        )

    # ---- pass 1: x1 = x @ W, tiled over rows only --------------------------
    x1 = pl.pallas_call(
        _proj_kernel,
        out_shape=jax.ShapeDtypeStruct((n_k_p, out_p), cdt),
        grid_spec=pltpu.PrefetchScalarGridSpec(
            num_scalar_prefetch=0,
            grid=(n_k_p // tk,),
            in_specs=[
                pl.BlockSpec((tk, in_feats), lambda i: (i, 0)),
                pl.BlockSpec((in_feats, out_p), lambda i: (0, 0)),  # resident
            ],
            out_specs=pl.BlockSpec((tk, out_p), lambda i: (i, 0)),
        ),
        compiler_params=pltpu.CompilerParams(
            dimension_semantics=("parallel",)
        ),
    )(x_p, w_p)

    # ---- pass 2: out = adj @ x1 + bias, tiled (rows x reduction) -----------
    grid = (n_rows_p // tm, n_k_p // tk)
    cost = pl.CostEstimate(
        flops=2 * n_rows_p * n_k_p * out_p,
        transcendentals=0,
        bytes_accessed=(
            n_rows_p * n_k_p * cdt.itemsize                    # adj stream (dominant)
            + grid[0] * n_k_p * out_p * cdt.itemsize           # x1 re-read per row tile
            + n_rows_p * out_p * jnp.dtype(out_dtype).itemsize  # output
        ),
    )

    out = pl.pallas_call(
        _agg_kernel,
        out_shape=jax.ShapeDtypeStruct((n_rows_p, out_p), out_dtype),
        grid_spec=pltpu.PrefetchScalarGridSpec(
            num_scalar_prefetch=0,
            grid=grid,
            in_specs=[
                pl.BlockSpec((tm, tk), lambda i, k: (i, k)),      # adj tile
                pl.BlockSpec((tk, out_p), lambda i, k: (k, 0)),   # x1 tile
                pl.BlockSpec((1, out_p), lambda i, k: (0, 0)),    # bias (resident)
            ],
            out_specs=pl.BlockSpec((tm, out_p), lambda i, k: (i, 0)),
            scratch_shapes=[pltpu.VMEM((tm, out_p), jnp.float32)],
        ),
        compiler_params=pltpu.CompilerParams(
            dimension_semantics=("parallel", "arbitrary")
        ),
        cost_estimate=cost,
    )(adj_p, x1, b_p)

    return out[:n, :out_feats]


if __name__ == "__main__":
    # Small shapes consistent with the module: N nodes, in/out feature dims.
    N, IN_FEATS, OUT_FEATS = 8, 16, 32

    key = jax.random.PRNGKey(0)
    k_x, k_adj, k_w, k_b = jax.random.split(key, 4)

    # Deterministic parameter init mirroring reset_parameters():
    # uniform(-stdv, stdv) with stdv = 1/sqrt(out_features).
    stdv = 1.0 / math.sqrt(OUT_FEATS)
    weight = jax.random.uniform(
        k_w, (IN_FEATS, OUT_FEATS), dtype=jnp.float32, minval=-stdv, maxval=stdv
    )
    bias = jax.random.uniform(
        k_b, (OUT_FEATS,), dtype=jnp.float32, minval=-stdv, maxval=stdv
    )

    x = jax.random.normal(k_x, (N, IN_FEATS), dtype=jnp.float32)
    adj = jax.random.uniform(k_adj, (N, N), dtype=jnp.float32)

    ref = adj @ (x @ weight) + bias

    # 1) default (native f32) compute path — tight numerical check.
    out_f32 = graph_convolution(x, weight, adj, bias)
    out_f32 = jax.block_until_ready(out_f32)
    assert out_f32.shape == (N, OUT_FEATS)
    assert jnp.allclose(out_f32, ref, atol=1e-4, rtol=1e-4)

    # 2) opt-in bf16 streaming path (bandwidth-optimized) — loose tolerance.
    out_bf16 = graph_convolution(x, weight, adj, bias, compute_dtype=jnp.bfloat16)
    out_bf16 = jax.block_until_ready(out_bf16)
    assert out_bf16.shape == (N, OUT_FEATS)
    assert jnp.allclose(out_bf16, ref, atol=5e-2, rtol=5e-2)

    # 3) multi-tile path: exercises (parallel, arbitrary) grid, the f32
    #    accumulator across K-tiles, and the zero-padding / slicing.
    N2 = 300
    k2x, k2a = jax.random.split(jax.random.PRNGKey(1), 2)
    x2 = jax.random.normal(k2x, (N2, IN_FEATS), dtype=jnp.float32)
    adj2 = jax.random.uniform(k2a, (N2, N2), dtype=jnp.float32)
    out2 = graph_convolution(
        x2, weight, adj2, bias, tile_rows=128, tile_k=128,
    )
    out2 = jax.block_until_ready(out2)
    ref2 = adj2 @ (x2 @ weight) + bias
    assert out2.shape == (N2, OUT_FEATS)
    assert jnp.allclose(out2, ref2, atol=2e-2, rtol=2e-2)

    # 4) bias-free path (module with bias=False).
    out_nb = graph_convolution(x, weight, adj, None)
    out_nb = jax.block_until_ready(out_nb)
    assert jnp.allclose(out_nb, adj @ (x @ weight), atol=1e-4, rtol=1e-4)

    print("KERNEL_OK")
</pallas_src>

<mosaic_0001>
module attributes {stable_mosaic.version = 11 : i64} {
  func.func @_proj_kernel(%arg0: i32, %arg1: memref<128x16xf32, #tpu.memory_space<vmem>>, %arg2: memref<16x128xf32, #tpu.memory_space<vmem>>, %arg3: memref<128x128xf32, #tpu.memory_space<vmem>>) attributes {dimension_semantics = [#tpu.dimension_semantics<parallel>], iteration_bounds = array<i64: 1>, scalar_prefetch = 0 : i64, scratch_operands = 0 : i64, tpu.core_type = #tpu.core_type<tc>, window_params = [{transform_indices = @transform_0, window_bounds = array<i64: 128, 16>}, {pipeline_mode = #tpu.pipeline_mode<synchronous>, transform_indices = @transform_1, window_bounds = array<i64: 16, 128>}, {transform_indices = @transform_2, window_bounds = array<i64: 128, 128>}]} {
    %c0 = arith.constant 0 : index
    %c0_0 = arith.constant 0 : index
    %0 = vector.load %arg1[%c0, %c0_0] : memref<128x16xf32, #tpu.memory_space<vmem>>, vector<128x16xf32>
    %c0_1 = arith.constant 0 : index
    %c0_2 = arith.constant 0 : index
    %1 = vector.load %arg2[%c0_1, %c0_2] : memref<16x128xf32, #tpu.memory_space<vmem>>, vector<16x128xf32>
    %cst = arith.constant dense<0.000000e+00> : vector<128x128xf32>
    %2 = tpu.matmul %0, %1, %cst {dimension_numbers = #tpu.dot_dimension_numbers<[1], [0], [0], [1], [0, 0, 1, 1], [], []>} : vector<128x16xf32>, vector<16x128xf32>, vector<128x128xf32> -> vector<128x128xf32>
    %c0_3 = arith.constant 0 : index
    %c0_4 = arith.constant 0 : index
    %3 = vector.load %arg3[%c0_3, %c0_4] : memref<128x128xf32, #tpu.memory_space<vmem>>, vector<128x128xf32>
    tpu.vector_store %arg3[%c0_3, %c0_4], %2 {strides = array<i32>} : memref<128x128xf32, #tpu.memory_space<vmem>>, vector<128x128xf32>,
    return
  }
  func.func @transform_0(%arg0: i32) -> (i32, i32) {
    %c0_i32 = arith.constant 0 : i32
    %c0_i32_0 = arith.constant 0 : i32
    return %arg0, %c0_i32 : i32, i32
  }
  func.func @transform_1(%arg0: i32) -> (i32, i32) {
    %c0_i32 = arith.constant 0 : i32
    %c0_i32_0 = arith.constant 0 : i32
    %c0_i32_1 = arith.constant 0 : i32
    return %c0_i32, %c0_i32_0 : i32, i32
  }
  func.func @transform_2(%arg0: i32) -> (i32, i32) {
    %c0_i32 = arith.constant 0 : i32
    %c0_i32_0 = arith.constant 0 : i32
    return %arg0, %c0_i32 : i32, i32
  }
}

</mosaic_0001>

<bundles_post_ra>
// kernel: tpu_custom_call.1
= control target key start
LH: loop header
LB: loop body
LE: loop exit
PB: predicated region body
PF: predicated region fallthrough
CT: control target
= control target key end

     0   :  { %vm30_vm0 = vcmask 130048   ;;  %s451_s0 = inlined_call_operand.vmem [shape: f32[128,16], index: 0, kind: input, shape index: {}]   ;;  %s452_s1 = inlined_call_operand.vmem [shape: f32[16,128], index: 1, kind: input, shape index: {}]   ;;  %s453_s2 = inlined_call_operand.hbm [shape: f32[128,128], index: 2, kind: output, shape index: {}]  }
   0x1   :  { %v28_v0 = vld [vmem:[%s452_s1] sm:$0xff]  ;;  %v29_v1 = vld [vmem:[%s452_s1 + $0x8] sm:$0xff]  ;;  %v14_v7 = vld [vmem:[%s451_s0 + $0x10] sm:$0xff] }
   0x2   :  { %v12_v2 = vld [vmem:[%s451_s0] sm:$0xff]  ;;  %v318_v3 = vpack.c.bf16 %v29_v1, %v28_v0  ;;  %v13_v5 = vld [vmem:[%s451_s0 + $0x8] sm:$0xff]  ;;  %v22_v8 = vld [vmem:[%s451_s0 + $0x50] sm:$0xff] }
   0x3   :  { %294 = vmatprep.mubr.msk.f32.mxu0 %vm30_vm0, %v12_v2  ;;  %v20_v4 = vld [vmem:[%s451_s0 + $0x40] sm:$0xff]  ;;  %v21_v6 = vld [vmem:[%s451_s0 + $0x48] sm:$0xff] }
   0x4   :  { %306 = vmatprep.mubr.msk.f32.mxu1 %vm30_vm0, %v20_v4  ;;  %319 = vmatprep.subr.bf16.mxu0 %v318_v3 }
   0x5   :  { %322 = vmatprep.subr.bf16.mxu1 %v318_v3  ;;  %321 = vmatpush3.bf16.msra.mxu0 %v318_v3 }
   0x6   :  { %323 = vmatpush3.bf16.msra.mxu1 %v318_v3 }
   0x7   :  { %7 = vsyncpa [#allocation3], 0  ;;  %v15_v9 = vld [vmem:[%s451_s0 + $0x18] sm:$0xff]  ;;  %v16_v11 = vld [vmem:[%s451_s0 + $0x20] sm:$0xff] }
   0x8   :  { %295 = vmatmul.mubr.msk.f32.vlgmr.msra.gmra.mrb[0].mxu0 %vm30_vm0, %v13_v5  ;;  %v23_v10 = vld [vmem:[%s451_s0 + $0x58] sm:$0xff]  ;;  %v24_v12 = vld [vmem:[%s451_s0 + $0x60] sm:$0xff]  ;;  %v17_v13 = vld [vmem:[%s451_s0 + $0x28] sm:$0xff] }
   0x9   :  { %307 = vmatmul.mubr.msk.f32.vlgmr.msra.gmra.mrb[0].mxu1 %vm30_vm0, %v21_v6  ;;  %297 = vmatprep.mubr.msk.f32.mxu0 %vm30_vm0, %v14_v7  ;;  %v25_v14 = vld [vmem:[%s451_s0 + $0x68] sm:$0xff]  ;;  %v18_v15 = vld [vmem:[%s451_s0 + $0x30] sm:$0xff]  ;;  %v19_v17 = vld [vmem:[%s451_s0 + $0x38] sm:$0xff] }
   0xa   :  { %309 = vmatprep.mubr.msk.f32.mxu1 %vm30_vm0, %v22_v8  ;;  %v26_v16 = vld [vmem:[%s451_s0 + $0x70] sm:$0xff]  ;;  %v27_v18 = vld [vmem:[%s451_s0 + $0x78] sm:$0xff]  ;;  %s351_s0 = smov [#allocation2]  }
   0xb   :  { %s245_s16 = sshll.u32 %s351_s0, 4  ;;  %s246_s16 = int_to_ptr.vmem [resolvable:$true] %s245_s16 }
   0xc   :  { %298 = vmatmul.mubr.msk.f32.gmra.mrb[2].mxu0 %vm30_vm0, %v15_v9  ;;  %s327_s17 = scalar_lea.vmem %s246_s16, 2048  ;;  %p332_p1 = scmp.lt.s32.totalorder %s246_s16, %s246_s16 }
   0xd   :  { %310 = vmatmul.mubr.msk.f32.gmra.mrb[2].mxu1 %vm30_vm0, %v23_v10  ;;  %300 = vmatprep.mubr.msk.f32.mxu0 %vm30_vm0, %v16_v11  ;;  %p328_p0 = scmp.ne.s32.totalorder %s246_s16, %s327_s17  ;;  %p333_p2 = scmp.lt.s32.totalorder %s327_s17, %s327_s17 }
   0xe   :  { %312 = vmatprep.mubr.msk.f32.mxu1 %vm30_vm0, %v24_v12 }
   0xf   :  { %p334_p3 = por %p333_p2, %p332_p1 }
  0x10   :  { %301 = vmatmul.mubr.msk.f32.gmra.mrb[4].mxu0 %vm30_vm0, %v17_v13 }
  0x11   :  { %313 = vmatmul.mubr.msk.f32.gmra.mrb[4].mxu1 %vm30_vm0, %v25_v14  ;;  %303 = vmatprep.mubr.msk.f32.mxu0 %vm30_vm0, %v18_v15  ;;  %p335_p4 = pnand %p334_p3, %p328_p0 }
  0x12   :  { %315 = vmatprep.mubr.msk.f32.mxu1 %vm30_vm0, %v26_v16 }
  0x14   :  { %304 = vmatmul.mubr.msk.f32.gmra.mrb[6].mxu0 %vm30_vm0, %v19_v17 }
  0x15   :  { %316 = vmatmul.mubr.msk.f32.gmra.mrb[6].mxu1 %vm30_vm0, %v27_v18 }
  0xdb   :  { %v296_v19 = vpop.f32.mrb[0].mxu0 }
  0xdc   :  { %v308_v20 = vpop.f32.mrb[0].mxu1  ;;  %225 = vst [vmem:[#allocation2 + $0x8] sm:$0xff] %v296_v19  ;;  %v145_v21 = vpop.f32.mrb[1].mxu0 }
  0xdd   :  { %233 = vst [vmem:[#allocation2 + $0x48] sm:$0xff] %v308_v20  ;;  %v185_v22 = vpop.f32.mrb[1].mxu1  ;;  %224 = vst [vmem:[#allocation2] sm:$0xff] %v145_v21 }
  0xde   :  { %232 = vst [vmem:[#allocation2 + $0x40] sm:$0xff] %v185_v22 }
  0xdf   :  { %v299_v23 = vpop.f32.mrb[2].mxu0 }
  0xe0   :  { %v311_v24 = vpop.f32.mrb[2].mxu1  ;;  %227 = vst [vmem:[#allocation2 + $0x18] sm:$0xff] %v299_v23  ;;  %v155_v25 = vpop.f32.mrb[3].mxu0 }
  0xe1   :  { %235 = vst [vmem:[#allocation2 + $0x58] sm:$0xff] %v311_v24  ;;  %v195_v26 = vpop.f32.mrb[3].mxu1  ;;  %226 = vst [vmem:[#allocation2 + $0x10] sm:$0xff] %v155_v25 }
  0xe2   :  { %234 = vst [vmem:[#allocation2 + $0x50] sm:$0xff] %v195_v26 }
  0xe3   :  { %v302_v27 = vpop.f32.mrb[4].mxu0 }
  0xe4   :  { %v314_v28 = vpop.f32.mrb[4].mxu1  ;;  %229 = vst [vmem:[#allocation2 + $0x28] sm:$0xff] %v302_v27  ;;  %v165_v29 = vpop.f32.mrb[5].mxu0 }
  0xe5   :  { %237 = vst [vmem:[#allocation2 + $0x68] sm:$0xff] %v314_v28  ;;  %v205_v30 = vpop.f32.mrb[5].mxu1  ;;  %228 = vst [vmem:[#allocation2 + $0x20] sm:$0xff] %v165_v29 }
  0xe6   :  { %236 = vst [vmem:[#allocation2 + $0x60] sm:$0xff] %v205_v30 }
  0xe7   :  { %v305_v31 = vpop.f32.mrb[6].mxu0 }
  0xe8   :  { %v317_v32 = vpop.f32.mrb[6].mxu1  ;;  %231 = vst [vmem:[#allocation2 + $0x38] sm:$0xff] %v305_v31  ;;  %v175_v33 = vpop.f32.mrb[7].mxu0 }
  0xe9   :  { %239 = vst [vmem:[#allocation2 + $0x78] sm:$0xff] %v317_v32  ;;  %v215_v34 = vpop.f32.mrb[7].mxu1  ;;  %230 = vst [vmem:[#allocation2 + $0x30] sm:$0xff] %v175_v33 }
  0xea   :  { %238 = vst [vmem:[#allocation2 + $0x70] sm:$0xff] %v215_v34 }
  0xeb   :  { %338 = shalt.err (!%p335_p4)
}
  0xec   :  { %s339_s19 = scalar_lea.hbm %s453_s2, 2048 }
  0xed   :  { %p340_p5 = scmp.ne.s32.totalorder %s453_s2, %s339_s19  ;;  %p343_p6 = scmp.lt.u32.totalorder %s339_s19, %s453_s2 }
  0xef   :  { %p345_p7 = pnand %p343_p6, %p340_p5 }
  0xf1   :  { %348 = shalt.err (!%p345_p7)
}
  0xf2   :  { %s352_s24 = smov 128   ;;  %s353_s25 = smov 8  }
  0xf3   :  { %251 = dma.vmem_to_hbm [thread:$0]  %s246_s16, 2048, %s453_s2, [#allocation3], %s352_s24, %s352_s24, %s353_s25  }
  0xf4   :  { %349 = dma.done.wait [#allocation3], 2048  }
  0xf5   :  { %350 = vsyncadd [#allocation3], 4294965248 }
  0xf6   :  { %255 = vsyncpa [#allocation3], 1 }

</bundles_post_ra>
